<compile_context>
chip_gen: v7x
topology: tpu7x:2x2x1
jax: 0.10.0
libtpu: 0.0.40
codegen_flags: <defaults>
</compile_context>

<pallas_src>
import functools

import jax
import jax.numpy as jnp
from jax import lax
from jax.experimental import pallas as pl
from jax.experimental.pallas import tpu as pltpu


def _moving_avg_kernel(x_ref, o_ref, xp_ref, *, kernel_size, pad, l_in):
    """Stride-1 replicate-padded moving average for one row tile.

    x_ref:  (R, L)      original series, rows on sublanes, time on lanes
    o_ref:  (R, L1)     stride-1 moving-average output (L1 = L + 2*pad - K + 1)
    xp_ref: (R, L+2pad) VMEM scratch holding the replicate-padded series
    """
    R = x_ref.shape[0]
    l1 = o_ref.shape[1]

    # Build the replicate-padded series in VMEM (padding never touches HBM).
    xp_ref[:, pad:pad + l_in] = x_ref[...]
    if pad > 0:
        xp_ref[:, 0:pad] = jnp.broadcast_to(x_ref[:, 0:1], (R, pad))
    tail = xp_ref.shape[1] - (pad + l_in)
    if tail > 0:
        xp_ref[:, pad + l_in:] = jnp.broadcast_to(
            x_ref[:, l_in - 1:l_in], (R, tail))

    inv_k = jnp.float32(1.0 / kernel_size)

    def _row_chunk(r0, rs):
        # Register-resident f32 accumulator: (rs<=8, L1) is a handful of vregs.
        acc = jnp.zeros((rs, l1), jnp.float32)
        for j in range(kernel_size):  # static lane-offset window slices
            acc = acc + xp_ref[pl.ds(r0, rs), pl.ds(j, l1)].astype(jnp.float32)
        o_ref[pl.ds(r0, rs), :] = (acc * inv_k).astype(o_ref.dtype)

    n_full = R // 8
    rem = R - n_full * 8
    if n_full > 0:
        def body(i, carry):
            _row_chunk(pl.multiple_of(i * 8, 8), 8)
            return carry
        lax.fori_loop(0, n_full, body, 0, unroll=(n_full <= 8))
    if rem > 0:
        _row_chunk(n_full * 8, rem)


def moving_avg(x, kernel_size, stride):
    """x: (B, L, D) -> (B, L_out, D), matching torch moving_avg.forward."""
    B, L, D = x.shape
    pad = (kernel_size - 1) // 2
    L_pad = L + 2 * pad
    L_out = (L_pad - kernel_size) // stride + 1
    L1 = L_pad - kernel_size + 1  # stride-1 output length

    # Lane-dense layout: independent (batch, feature) series on sublanes,
    # time on lanes.  (Layout plumbing only; hot loop runs lane-dense.)
    rows = B * D
    xt = jnp.transpose(x, (0, 2, 1)).reshape(rows, L)

    # Row tiling: big enough blocks to amortize per-step overhead, small
    # enough to stay well under the (v7x 64 MiB) VMEM budget.
    R_TILE = rows if rows <= 512 else 512
    n_r = pl.cdiv(rows, R_TILE)

    kernel = functools.partial(
        _moving_avg_kernel, kernel_size=kernel_size, pad=pad, l_in=L)

    dt = x.dtype.itemsize
    in_b = R_TILE * L * dt
    out_b = R_TILE * L1 * dt
    scr_b = R_TILE * L_pad * dt
    vmem_limit = int(min(max(2 * (2 * in_b + 2 * out_b + scr_b), 16 << 20),
                         48 << 20))

    out1 = pl.pallas_call(
        kernel,
        out_shape=jax.ShapeDtypeStruct((rows, L1), x.dtype),
        grid_spec=pltpu.PrefetchScalarGridSpec(
            num_scalar_prefetch=0,
            grid=(n_r,),
            in_specs=[pl.BlockSpec((R_TILE, L), lambda r: (r, 0))],
            out_specs=pl.BlockSpec((R_TILE, L1), lambda r: (r, 0)),
            scratch_shapes=[pltpu.VMEM((R_TILE, L_pad), x.dtype)],
        ),
        compiler_params=pltpu.CompilerParams(
            dimension_semantics=("parallel",),
            vmem_limit_bytes=vmem_limit,
        ),
        cost_estimate=pl.CostEstimate(
            flops=rows * L1 * kernel_size,
            transcendentals=0,
            bytes_accessed=rows * (L + L1) * dt),
    )(xt)

    if stride > 1:
        # TODO(synk): a dedicated strided path would avoid computing/storing the
        # stride-1 positions discarded by this subsample (Autoformer uses stride=1).
        out1 = out1[:, ::stride]
    out = out1[:, :L_out]
    return jnp.transpose(out.reshape(B, D, L_out), (0, 2, 1))


def moving_avg_ref(x, kernel_size, stride):
    """Pure-JAX reference mirroring the PyTorch module."""
    pad = (kernel_size - 1) // 2
    front = jnp.repeat(x[:, 0:1, :], pad, axis=1)
    end = jnp.repeat(x[:, -1:, :], pad, axis=1)
    xp = jnp.concatenate([front, x, end], axis=1)
    L_pad = xp.shape[1]
    L_out = (L_pad - kernel_size) // stride + 1
    outs = []
    for t in range(L_out):
        outs.append(
            jnp.mean(xp[:, t * stride:t * stride + kernel_size, :], axis=1))
    return jnp.stack(outs, axis=1)


if __name__ == "__main__":
    key = jax.random.PRNGKey(0)
    B, L, D = 2, 16, 8
    x = jax.random.normal(key, (B, L, D), dtype=jnp.float32)

    # stride=1 (series_decomp usage)
    out = jax.block_until_ready(moving_avg(x, 5, 1))
    ref = moving_avg_ref(x, 5, 1)
    assert out.shape == ref.shape, (out.shape, ref.shape)
    assert jnp.allclose(out, ref, atol=1e-5, rtol=1e-5), "mismatch (K=5,s=1)"

    # stride>1 path
    out2 = jax.block_until_ready(moving_avg(x, 7, 2))
    ref2 = moving_avg_ref(x, 7, 2)
    assert out2.shape == ref2.shape, (out2.shape, ref2.shape)
    assert jnp.allclose(out2, ref2, atol=1e-5, rtol=1e-5), "mismatch (K=7,s=2)"

    print("KERNEL_OK")
</pallas_src>

<mosaic_0001>
module attributes {stable_mosaic.version = 11 : i64} {
  func.func @_moving_avg_kernel(%arg0: i32, %arg1: memref<16x16xf32, #tpu.memory_space<vmem>>, %arg2: memref<16x16xf32, #tpu.memory_space<vmem>>, %arg3: memref<16x20xf32, #tpu.memory_space<vmem>>) attributes {dimension_semantics = [#tpu.dimension_semantics<parallel>], iteration_bounds = array<i64: 1>, scalar_prefetch = 0 : i64, scratch_operands = 1 : i64, tpu.core_type = #tpu.core_type<tc>, window_params = [{transform_indices = @transform_0, window_bounds = array<i64: 16, 16>}, {transform_indices = @transform_1, window_bounds = array<i64: 16, 16>}]} {
    %c0 = arith.constant 0 : index
    %c0_0 = arith.constant 0 : index
    %0 = vector.load %arg1[%c0, %c0_0] : memref<16x16xf32, #tpu.memory_space<vmem>>, vector<16x16xf32>
    %c0_1 = arith.constant 0 : index
    %c2 = arith.constant 2 : index
    %1 = vector.load %arg3[%c0_1, %c2] : memref<16x20xf32, #tpu.memory_space<vmem>>, vector<16x16xf32>
    tpu.vector_store %arg3[%c0_1, %c2], %0 {strides = array<i32>} : memref<16x20xf32, #tpu.memory_space<vmem>>, vector<16x16xf32>,
    %c0_2 = arith.constant 0 : index
    %c0_3 = arith.constant 0 : index
    %2 = vector.load %arg1[%c0_2, %c0_3] : memref<16x16xf32, #tpu.memory_space<vmem>>, vector<16x1xf32>
    %3 = vector.shape_cast %2 : vector<16x1xf32> to vector<16x1xf32>
    %4 = vector.broadcast %3 : vector<16x1xf32> to vector<16x2xf32>
    %c0_4 = arith.constant 0 : index
    %c0_5 = arith.constant 0 : index
    %5 = vector.load %arg3[%c0_4, %c0_5] : memref<16x20xf32, #tpu.memory_space<vmem>>, vector<16x2xf32>
    tpu.vector_store %arg3[%c0_4, %c0_5], %4 {strides = array<i32>} : memref<16x20xf32, #tpu.memory_space<vmem>>, vector<16x2xf32>,
    %c0_6 = arith.constant 0 : index
    %c15 = arith.constant 15 : index
    %6 = vector.load %arg1[%c0_6, %c15] : memref<16x16xf32, #tpu.memory_space<vmem>>, vector<16x1xf32>
    %7 = vector.shape_cast %6 : vector<16x1xf32> to vector<16x1xf32>
    %8 = vector.broadcast %7 : vector<16x1xf32> to vector<16x2xf32>
    %c0_7 = arith.constant 0 : index
    %c18 = arith.constant 18 : index
    %9 = vector.load %arg3[%c0_7, %c18] : memref<16x20xf32, #tpu.memory_space<vmem>>, vector<16x2xf32>
    tpu.vector_store %arg3[%c0_7, %c18], %8 {strides = array<i32>} : memref<16x20xf32, #tpu.memory_space<vmem>>, vector<16x2xf32>,
    %cst = arith.constant 2.000000e-01 : f32
    %c0_i32 = arith.constant 0 : i32
    %c8_i32 = arith.constant 8 : i32
    %10 = arith.muli %c0_i32, %c8_i32 : i32
    %11 = tpu.assume_multiple %10, 8 : i32
    %cst_8 = arith.constant 0.000000e+00 : f32
    %12 = vector.broadcast %cst_8 : f32 to vector<8x16xf32>
    %13 = arith.index_cast %11 : i32 to index
    %c0_9 = arith.constant 0 : index
    %14 = vector.load %arg3[%13, %c0_9] : memref<16x20xf32, #tpu.memory_space<vmem>>, vector<8x16xf32>
    %15 = arith.addf %12, %14 : vector<8x16xf32>
    %16 = arith.index_cast %11 : i32 to index
    %c1 = arith.constant 1 : index
    %17 = vector.load %arg3[%16, %c1] : memref<16x20xf32, #tpu.memory_space<vmem>>, vector<8x16xf32>
    %18 = arith.addf %15, %17 : vector<8x16xf32>
    %19 = arith.index_cast %11 : i32 to index
    %c2_10 = arith.constant 2 : index
    %20 = vector.load %arg3[%19, %c2_10] : memref<16x20xf32, #tpu.memory_space<vmem>>, vector<8x16xf32>
    %21 = arith.addf %18, %20 : vector<8x16xf32>
    %22 = arith.index_cast %11 : i32 to index
    %c3 = arith.constant 3 : index
    %23 = vector.load %arg3[%22, %c3] : memref<16x20xf32, #tpu.memory_space<vmem>>, vector<8x16xf32>
    %24 = arith.addf %21, %23 : vector<8x16xf32>
    %25 = arith.index_cast %11 : i32 to index
    %c4 = arith.constant 4 : index
    %26 = vector.load %arg3[%25, %c4] : memref<16x20xf32, #tpu.memory_space<vmem>>, vector<8x16xf32>
    %27 = arith.addf %24, %26 : vector<8x16xf32>
    %28 = vector.broadcast %cst : f32 to vector<8x16xf32>
    %29 = arith.mulf %27, %28 : vector<8x16xf32>
    %30 = arith.index_cast %11 : i32 to index
    %c0_11 = arith.constant 0 : index
    %31 = vector.load %arg2[%30, %c0_11] : memref<16x16xf32, #tpu.memory_space<vmem>>, vector<8x16xf32>
    tpu.vector_store %arg2[%30, %c0_11], %29 {strides = array<i32>} : memref<16x16xf32, #tpu.memory_space<vmem>>, vector<8x16xf32>,
    %c1_i32 = arith.constant 1 : i32
    %c8_i32_12 = arith.constant 8 : i32
    %32 = arith.muli %c1_i32, %c8_i32_12 : i32
    %33 = tpu.assume_multiple %32, 8 : i32
    %cst_13 = arith.constant 0.000000e+00 : f32
    %34 = vector.broadcast %cst_13 : f32 to vector<8x16xf32>
    %35 = arith.index_cast %33 : i32 to index
    %c0_14 = arith.constant 0 : index
    %36 = vector.load %arg3[%35, %c0_14] : memref<16x20xf32, #tpu.memory_space<vmem>>, vector<8x16xf32>
    %37 = arith.addf %34, %36 : vector<8x16xf32>
    %38 = arith.index_cast %33 : i32 to index
    %c1_15 = arith.constant 1 : index
    %39 = vector.load %arg3[%38, %c1_15] : memref<16x20xf32, #tpu.memory_space<vmem>>, vector<8x16xf32>
    %40 = arith.addf %37, %39 : vector<8x16xf32>
    %41 = arith.index_cast %33 : i32 to index
    %c2_16 = arith.constant 2 : index
    %42 = vector.load %arg3[%41, %c2_16] : memref<16x20xf32, #tpu.memory_space<vmem>>, vector<8x16xf32>
    %43 = arith.addf %40, %42 : vector<8x16xf32>
    %44 = arith.index_cast %33 : i32 to index
    %c3_17 = arith.constant 3 : index
    %45 = vector.load %arg3[%44, %c3_17] : memref<16x20xf32, #tpu.memory_space<vmem>>, vector<8x16xf32>
    %46 = arith.addf %43, %45 : vector<8x16xf32>
    %47 = arith.index_cast %33 : i32 to index
    %c4_18 = arith.constant 4 : index
    %48 = vector.load %arg3[%47, %c4_18] : memref<16x20xf32, #tpu.memory_space<vmem>>, vector<8x16xf32>
    %49 = arith.addf %46, %48 : vector<8x16xf32>
    %50 = vector.broadcast %cst : f32 to vector<8x16xf32>
    %51 = arith.mulf %49, %50 : vector<8x16xf32>
    %52 = arith.index_cast %33 : i32 to index
    %c0_19 = arith.constant 0 : index
    %53 = vector.load %arg2[%52, %c0_19] : memref<16x16xf32, #tpu.memory_space<vmem>>, vector<8x16xf32>
    tpu.vector_store %arg2[%52, %c0_19], %51 {strides = array<i32>} : memref<16x16xf32, #tpu.memory_space<vmem>>, vector<8x16xf32>,
    %c2_i32 = arith.constant 2 : i32
    return
  }
  func.func @transform_0(%arg0: i32) -> (i32, i32) {
    %c0_i32 = arith.constant 0 : i32
    %c0_i32_0 = arith.constant 0 : i32
    return %arg0, %c0_i32 : i32, i32
  }
  func.func @transform_1(%arg0: i32) -> (i32, i32) {
    %c0_i32 = arith.constant 0 : i32
    %c0_i32_0 = arith.constant 0 : i32
    return %arg0, %c0_i32 : i32, i32
  }
}

</mosaic_0001>

<bundles_post_ra>
// kernel: tpu_custom_call.1
= control target key start
LH: loop header
LB: loop body
LE: loop exit
PB: predicated region body
PF: predicated region fallthrough
CT: control target
= control target key end

     0   :  { %6 = vsyncpa [#allocation4], 0  ;;  %s241_s0 = inlined_call_operand.hbm [shape: f32[16,16], index: 0, kind: input, shape index: {}]   ;;  %s242_s1 = inlined_call_operand.hbm [shape: f32[16,16], index: 1, kind: output, shape index: {}]  }
   0x1   :  { %7 = vsyncpa [#allocation5], 0  ;;  %s190_s6 = smov [#allocation3]   ;;  %s142_s10 = scalar_lea.hbm %s241_s0, 256 }
   0x2   :  { %s13_s7 = sshll.u32 %s190_s6, 4  ;;  %p143_p0 = scmp.ne.s32.totalorder %s241_s0, %s142_s10  ;;  %s14_s7 = int_to_ptr.vmem [resolvable:$true] %s13_s7 }
   0x3   :  { %p146_p1 = scmp.lt.u32.totalorder %s142_s10, %s241_s0 }
   0x5   :  { %p148_p2 = pnand %p146_p1, %p143_p0 }
   0x7   :  { %151 = shalt.err (!%p148_p2)
}
   0x8   :  { %s152_s15 = scalar_lea.vmem %s14_s7, 256  ;;  %p157_p4 = scmp.lt.s32.totalorder %s14_s7, %s14_s7 }
   0x9   :  { %p153_p3 = scmp.ne.s32.totalorder %s14_s7, %s152_s15  ;;  %p158_p5 = scmp.lt.s32.totalorder %s152_s15, %s152_s15 }
   0xb   :  { %p159_p6 = por %p158_p5, %p157_p4 }
   0xd   :  { %p160_p7 = pnand %p159_p6, %p153_p3 }
   0xf   :  { %163 = shalt.err (!%p160_p7)
}
  0x10   :  { %s191_s16 = smov 128   ;;  %s192_s17 = smov 8  }
  0x11   :  { %19 = dma.hbm_to_vmem [thread:$0]  %s241_s0, 256, %s14_s7, [#allocation4], %s191_s16, %s191_s16, %s192_s17  }
  0x12   :  { %186 = dma.done.wait [#allocation4], 256  }
  0x13   :  { %187 = vsyncadd [#allocation4], 4294967040  ;;  %v193_v0 = vmov 15   ;;  %v194_v1 = vmov 0   ;;  %v51_v2 = vld [vmem:[#allocation3] sm:$0xff]  ;;  %v52_v3 = vld [vmem:[#allocation3 + $0x8] sm:$0xff] }
  0x14   :  { %140 = vset.pattern.permute.xlu1 %v193_v0  ;;  %139 = vset.pattern.permute.xlu0 %v194_v1  ;;  %s195_s20 = smov 2   ;;  %vm33_vm0 = vcmask 146448   ;;  %vm48_vm1 = vcmask 15360   ;;  %vm63_vm2 = vcmask 162960   ;;  %s196_s0 = smov 127   ;;  %vm86_vm3 = vcmask 130048  }
  0x15   :  { %55 = vperm.xlu1 %140, %v51_v2   ;;  %40 = vperm.xlu0 %139, %v51_v2   ;;  %s197_s21 = smov 126   ;;  %s198_s22 = smov 125  }
  0x16   :  { %s199_s23 = smov 124   ;;  %s200_s24 = smov [#allocation6]  }
  0x17   :  { %s116_s25 = sshll.u32 %s200_s24, 4  ;;  %s117_s25 = int_to_ptr.vmem [resolvable:$true] %s116_s25 }
  0x18   :  { %s164_s26 = scalar_lea.vmem %s117_s25, 256  ;;  %p169_p9 = scmp.lt.s32.totalorder %s117_s25, %s117_s25 }
  0x19   :  { %60 = vperm.xlu1 %140, %v52_v3   ;;  %45 = vperm.xlu0 %139, %v52_v3   ;;  %p165_p8 = scmp.ne.s32.totalorder %s117_s25, %s164_s26  ;;  %p170_p10 = scmp.lt.s32.totalorder %s164_s26, %s164_s26 }
  0x1b   :  { %p171_p11 = por %p170_p10, %p169_p9 }
  0x1d   :  { %29 = vrot.lane.b32.xlu1 %v52_v3, %s195_s20  ;;  %27 = vrot.lane.b32.xlu0 %v51_v2, %s195_s20  ;;  %p172_p12 = pnand %p171_p11, %p165_p8 }
  0x1e   :  { %141 = vset.pattern.permute.xlu0 %v193_v0 }
  0x94   :  { %v56_v4 = vpop.permute.xlu1 %55  ;;  %v41_v5 = vpop.permute.xlu0 %40 }
  0x98   :  { %v61_v6 = vpop.permute.xlu1 %60  ;;  %v46_v7 = vpop.permute.xlu0 %45 }
  0x9c   :  { %v30_v8 = vpop.permute.xlu1 %29  ;;  %v28_v9 = vpop.permute.xlu0 %27 }
  0x9d   :  { %35 = vst.msk [vmem:[#allocation2 + $0x8] sm:$0xff] %vm33_vm0, %v30_v8  ;;  %34 = vst.msk [vmem:[#allocation2] sm:$0xff] %vm33_vm0, %v28_v9 }
  0x9e   :  { %50 = vst.msk [vmem:[#allocation2 + $0x8] sm:$0xff] %vm48_vm1, %v46_v7  ;;  %49 = vst.msk [vmem:[#allocation2] sm:$0xff] %vm48_vm1, %v41_v5 }
  0x9f   :  { %65 = vst.msk [vmem:[#allocation2 + $0x8] sm:$0xff] %vm63_vm2, %v61_v6  ;;  %64 = vst.msk [vmem:[#allocation2] sm:$0xff] %vm63_vm2, %v56_v4 }
  0xa6   :  { %v89_v10 = vld [vmem:[#allocation2 + $0x8] sm:$0xff]  ;;  %v66_v11 = vld [vmem:[#allocation2] sm:$0xff] }
  0xa7   :  { %92 = vrot.lane.b32.xlu1 %v89_v10, %s196_s0  ;;  %69 = vrot.lane.b32.xlu0 %v66_v11, %s196_s0 }
  0xab   :  { %96 = vrot.lane.b32.xlu1 %v89_v10, %s197_s21  ;;  %73 = vrot.lane.b32.xlu0 %v66_v11, %s197_s21 }
  0xaf   :  { %100 = vrot.lane.b32.xlu1 %v89_v10, %s198_s22  ;;  %77 = vrot.lane.b32.xlu0 %v66_v11, %s198_s22 }
  0xb3   :  { %104 = vrot.lane.b32.xlu1 %v89_v10, %s199_s23  ;;  %81 = vrot.lane.b32.xlu0 %v66_v11, %s199_s23 }
 0x119   :  { %v93_v12 = vpop.permute.xlu1 %92  ;;  %v70_v13 = vpop.permute.xlu0 %69 }
 0x11a   :  { %v95_v16 = vadd.f32 %v93_v12, %v89_v10  ;;  %v72_v17 = vadd.f32 %v70_v13, %v66_v11 }
 0x11d   :  { %v97_v14 = vpop.permute.xlu1 %96  ;;  %v74_v15 = vpop.permute.xlu0 %73 }
 0x11e   :  { %v99_v20 = vadd.f32 %v97_v14, %v95_v16  ;;  %v76_v21 = vadd.f32 %v74_v15, %v72_v17 }
 0x121   :  { %v101_v18 = vpop.permute.xlu1 %100  ;;  %v78_v19 = vpop.permute.xlu0 %77 }
 0x122   :  { %v103_v22 = vadd.f32 %v101_v18, %v99_v20  ;;  %v80_v23 = vadd.f32 %v78_v19, %v76_v21 }
 0x125   :  { %v105_v24 = vpop.permute.xlu1 %104  ;;  %v82_v25 = vpop.permute.xlu0 %81 }
 0x126   :  { %v107_v26 = vadd.f32 %v105_v24, %v103_v22  ;;  %v84_v27 = vadd.f32 %v82_v25, %v80_v23 }
 0x128   :  { %v108_v28 = vmul.f32 0.2, %v107_v26  ;;  %v85_v29 = vmul.f32 0.2, %v84_v27 }
 0x12a   :  { %87 = vst.msk [vmem:[#allocation6] sm:$0xff] %vm86_vm3, %v85_v29  ;;  %110 = vst.msk [vmem:[#allocation6 + $0x8] sm:$0xff] %vm86_vm3, %v108_v28 }
 0x12b   :  { %175 = shalt.err (!%p172_p12)
}
 0x12c   :  { %s176_s29 = scalar_lea.hbm %s242_s1, 256 }
 0x12d   :  { %p177_p13 = scmp.ne.s32.totalorder %s242_s1, %s176_s29  ;;  %p180_p0 = scmp.lt.u32.totalorder %s176_s29, %s242_s1 }
 0x12f   :  { %p182_p1 = pnand %p180_p0, %p177_p13 }
 0x131   :  { %185 = shalt.err (!%p182_p1)
}
 0x132   :  { %122 = dma.vmem_to_hbm [thread:$0]  %s117_s25, 256, %s242_s1, [#allocation5], %s191_s16, %s191_s16, %s192_s17  }
 0x133   :  { %188 = dma.done.wait [#allocation5], 256  }
 0x134   :  { %189 = vsyncadd [#allocation5], 4294967040 }
 0x135   :  { %126 = vsyncpa [#allocation4], 1 }
 0x136   :  { %127 = vsyncpa [#allocation5], 1 }

</bundles_post_ra>
